<compile_context>
chip_gen: v5e
topology: v5e:2x2
jax: 0.10.0
libtpu: 0.0.40
codegen_flags: <defaults>
</compile_context>

<pallas_src>
import functools
import math

import jax
import jax.numpy as jnp
from jax.experimental import pallas as pl
from jax.experimental.pallas import tpu as pltpu

_EPS = 1e-12                       # eps used by F.normalize
_VMEM_LIMIT = 48 * 1024 * 1024     # above 16/32 MiB scoped defaults, fits v7x too


def _round_up(n, m):
    return ((n + m - 1) // m) * m


# -----------------------------------------------------------------------------
# Kernel 1: fused  [+res]  ->  (x @ W.T + b)  ->  row L2 normalise  ->  * scale
# -----------------------------------------------------------------------------
def _linear_l2norm_kernel(*refs, scale, with_residual):
    if with_residual:
        x_ref, r_ref, w_ref, b_ref, o_ref = refs
        x = x_ref[...] + r_ref[...]           # fused skip connection
    else:
        x_ref, w_ref, b_ref, o_ref = refs
        x = x_ref[...]
    # NT layout: contract last dim of both operands -> no in-kernel transpose.
    y = jax.lax.dot_general(
        x, w_ref[...],
        dimension_numbers=(((1,), (1,)), ((), ())),
        preferred_element_type=jnp.float32,
    ) + b_ref[...].astype(jnp.float32)
    sumsq = jnp.sum(y * y, axis=1, keepdims=True)
    inv = jax.lax.rsqrt(jnp.maximum(sumsq, _EPS * _EPS))   # EUP, == 1/max(||y||,eps)
    o_ref[...] = (y * (scale * inv)).astype(o_ref.dtype)


def linear_l2norm(x, w, b, scale, *, res=None, tm=256):
    """normalize((x [+res]) @ w.T + b, p=2, dim=1) * scale  (one fused kernel)."""
    N, in_dim = x.shape
    out_dim = w.shape[0]
    assert N % tm == 0, "node dim must be pre-padded to the row tile"
    b2 = b.reshape(1, out_dim)

    in_specs = [pl.BlockSpec((tm, in_dim), lambda i: (i, 0))]
    args = [x]
    if res is not None:
        in_specs.append(pl.BlockSpec((tm, in_dim), lambda i: (i, 0)))
        args.append(res)
    in_specs += [
        pl.BlockSpec((out_dim, in_dim), lambda i: (0, 0)),   # resident weights
        pl.BlockSpec((1, out_dim), lambda i: (0, 0)),        # resident bias
    ]
    args += [w, b2]

    return pl.pallas_call(
        functools.partial(_linear_l2norm_kernel, scale=float(scale),
                          with_residual=res is not None),
        out_shape=jax.ShapeDtypeStruct((N, out_dim), jnp.float32),
        grid_spec=pltpu.PrefetchScalarGridSpec(
            num_scalar_prefetch=0,
            grid=(N // tm,),
            in_specs=in_specs,
            out_specs=pl.BlockSpec((tm, out_dim), lambda i: (i, 0)),
        ),
        compiler_params=pltpu.CompilerParams(
            dimension_semantics=("parallel",),
            vmem_limit_bytes=_VMEM_LIMIT),
    )(*args)


# -----------------------------------------------------------------------------
# Kernel 2: one APPNP propagation step with tiled contraction over N and an
#           optional fused epilogue.
#           out = A_prop @ z + alpha * h    (A_prop = (1-alpha)*A_hat, bf16)
#           epilogue: none | relu | L2norm*post_scale
# -----------------------------------------------------------------------------
def _appnp_step_kernel(a_ref, z_ref, h_ref, o_ref, acc_ref, *,
                       alpha, epilogue, post_scale):
    k = pl.program_id(1)

    @pl.when(k == 0)
    def _():
        acc_ref[...] = jnp.zeros_like(acc_ref)

    # bf16 x bf16 MXU dot with f32 accumulation; (1-alpha) is folded into a_ref.
    acc_ref[...] += jnp.dot(a_ref[...], z_ref[...].astype(jnp.bfloat16),
                            preferred_element_type=jnp.float32)

    @pl.when(k == pl.num_programs(1) - 1)
    def _():
        y = acc_ref[...] + alpha * h_ref[...].astype(jnp.float32)
        if epilogue == "relu":
            y = jnp.maximum(y, 0.0)
        elif epilogue == "l2norm":
            sumsq = jnp.sum(y * y, axis=1, keepdims=True)
            y = y * (post_scale * jax.lax.rsqrt(jnp.maximum(sumsq, _EPS * _EPS)))
        o_ref[...] = y.astype(o_ref.dtype)


def appnp_step(a_prop, z, h, alpha, *, epilogue="none", post_scale=1.0,
               tm=256, tk=256):
    N, D = z.shape
    assert N % tm == 0 and N % tk == 0, "node dim must be pre-padded to tiles"
    return pl.pallas_call(
        functools.partial(_appnp_step_kernel, alpha=float(alpha),
                          epilogue=epilogue, post_scale=float(post_scale)),
        out_shape=jax.ShapeDtypeStruct((N, D), jnp.float32),
        grid_spec=pltpu.PrefetchScalarGridSpec(
            num_scalar_prefetch=0,
            grid=(N // tm, N // tk),
            in_specs=[
                pl.BlockSpec((tm, tk), lambda i, k: (i, k)),   # bf16 A_prop tile
                pl.BlockSpec((tk, D), lambda i, k: (k, 0)),    # feature tile
                pl.BlockSpec((tm, D), lambda i, k: (i, 0)),    # teleport term
            ],
            out_specs=pl.BlockSpec((tm, D), lambda i, k: (i, 0)),
            scratch_shapes=[pltpu.VMEM((tm, D), jnp.float32)],
        ),
        compiler_params=pltpu.CompilerParams(
            dimension_semantics=("parallel", "arbitrary"),
            vmem_limit_bytes=_VMEM_LIMIT),
    )(a_prop, z, h)


# -----------------------------------------------------------------------------
# Model wrappers (compose the Pallas kernels)
# -----------------------------------------------------------------------------
def normalized_gcn_conv(x, a_prop, w, b, *, scaling_factor=1.8, K=2, alpha=0.15,
                        epilogue="none", post_scale=1.0, residual=None,
                        tm=256, tk=256):
    """NormalizedGCNConv forward; the GNAE post-activation (relu / L2norm*1.5)
    is fused into the last APPNP step's epilogue, and an incoming residual is
    fused into the linear kernel."""
    assert K >= 1, "K=0 unsupported (post-activation is fused into APPNP)"
    h = linear_l2norm(x, w, b, scaling_factor, res=residual, tm=tm)
    z = h
    for k in range(K):
        ep = epilogue if k == K - 1 else "none"
        z = appnp_step(a_prop, z, h, alpha, epilogue=ep, post_scale=post_scale,
                       tm=tm, tk=tk)
    return z


def _pad_wb(w, b, out_p, in_p):
    o, i = w.shape
    wp = jnp.pad(w, ((0, out_p - o), (0, in_p - i)))
    bp = jnp.pad(b, (0, out_p - b.shape[0]))
    return wp, bp


def gnae_enc_forward(params, x, a_hat, *, depth, link_len, K=2, alpha=0.15,
                     tm=256, tk=256):
    assert depth > link_len, "Link length cannot be bigger than depth"
    N, in_dim = x.shape
    hidden_dim = params["convs"][0][0].shape[0]
    out_dim = params["convx"][0].shape[0]

    # Node-dim padding (masked/partial tiles avoided) and lane-dense feature pad.
    Np = _round_up(N, math.lcm(tm, tk))
    hp = _round_up(hidden_dim, 128)
    op = _round_up(out_dim, 128)

    xp = jnp.pad(x, ((0, Np - N), (0, 0)))
    a_p = jnp.pad(a_hat, ((0, Np - N), (0, Np - N)))
    # Fold (1-alpha) into the adjacency once and cast the dominant HBM stream
    # to bf16 (accumulation stays f32 in-kernel).
    a_prop = ((1.0 - alpha) * a_p).astype(jnp.bfloat16)

    convs = params["convs"]
    w0, b0 = _pad_wb(*convs[0], hp, in_dim)
    out = normalized_gcn_conv(xp, a_prop, w0, b0, K=K, alpha=alpha,
                              epilogue="relu", tm=tm, tk=tk)
    res, res_ind = out, 0
    for i in range(1, depth - 1):
        wi, bi = _pad_wb(*convs[i], hp, hp)
        skip = res if i == res_ind + link_len else None
        out = normalized_gcn_conv(out, a_prop, wi, bi, K=K, alpha=alpha,
                                  epilogue="l2norm", post_scale=1.5,
                                  residual=skip, tm=tm, tk=tk)
        if i == res_ind + link_len:
            res, res_ind = out, i

    wx, bx = _pad_wb(*params["convx"], op, hp)
    z = normalized_gcn_conv(out, a_prop, wx, bx, K=K, alpha=alpha, tm=tm, tk=tk)
    return z[:N, :out_dim]


# -----------------------------------------------------------------------------
# Preprocessing (plain JAX): sparse edge_index -> dense GCN-normalised adjacency
# -----------------------------------------------------------------------------
def build_gcn_adjacency(edge_index, num_nodes):
    # TODO(synk): sparse scatter has no clean Pallas equivalent; done in JAX.
    row, col = edge_index[0], edge_index[1]
    a = jnp.zeros((num_nodes, num_nodes), jnp.float32)
    a = a.at[row, col].set(1.0)
    a = a.at[col, row].set(1.0)                  # undirected graph
    idx = jnp.arange(num_nodes)
    a = a.at[idx, idx].set(1.0)                  # self loops
    deg = jnp.sum(a, axis=1)
    d_inv_sqrt = jax.lax.rsqrt(deg)              # deg >= 1 due to self loops
    return a * d_inv_sqrt[:, None] * d_inv_sqrt[None, :]


# -----------------------------------------------------------------------------
# Pure-JAX f32 reference (same math, no Pallas, no bf16) for correctness check
# -----------------------------------------------------------------------------
def _ref_l2norm(y, scale):
    n = jnp.sqrt(jnp.sum(y * y, axis=1, keepdims=True))
    return y * (scale / jnp.maximum(n, _EPS))


def ref_conv(x, a_hat, w, b, scaling_factor=1.8, K=2, alpha=0.15):
    h = _ref_l2norm(x @ w.T + b, scaling_factor)
    z = h
    for _ in range(K):
        z = (1.0 - alpha) * (a_hat @ z) + alpha * h
    return z


def ref_forward(params, x, a_hat, depth, link_len, K=2, alpha=0.15):
    out = jnp.maximum(ref_conv(x, a_hat, *params["convs"][0], K=K, alpha=alpha), 0.0)
    res, res_ind = out, 0
    for i in range(1, depth - 1):
        if i == res_ind + link_len:
            out = out + res
        out = _ref_l2norm(ref_conv(out, a_hat, *params["convs"][i], K=K, alpha=alpha), 1.5)
        if i == res_ind + link_len:
            res, res_ind = out, i
    return ref_conv(out, a_hat, *params["convx"], K=K, alpha=alpha)


def init_linear(key, in_dim, out_dim):
    kw, kb = jax.random.split(key)
    w = jax.random.normal(kw, (out_dim, in_dim), jnp.float32) / jnp.sqrt(float(in_dim))
    b = jax.random.normal(kb, (out_dim,), jnp.float32) * 0.01
    return w, b


if __name__ == "__main__":
    key = jax.random.PRNGKey(0)
    N, E = 256, 1024                            # nodes, edges
    in_dim, hidden_dim, out_dim = 16, 32, 16
    depth, link_len, K, alpha = 4, 2, 2, 0.15   # depth=4 exercises the residual link

    k_x, k_e, k_p = jax.random.split(key, 3)
    x = jax.random.normal(k_x, (N, in_dim), jnp.float32)
    edge_index = jax.random.randint(k_e, (2, E), 0, N, dtype=jnp.int32)
    a_hat = build_gcn_adjacency(edge_index, N)

    # Parameters: convs[0] in->hidden, convs[1..depth-1] hidden->hidden, convx hidden->out
    keys = jax.random.split(k_p, depth + 1)
    convs = [init_linear(keys[0], in_dim, hidden_dim)]
    for d in range(1, depth):
        convs.append(init_linear(keys[d], hidden_dim, hidden_dim))
    convx = init_linear(keys[depth], hidden_dim, out_dim)
    params = {"convs": convs, "convx": convx}

    # Small tiles here so the multi-step (row x contraction) grid path is exercised.
    out = gnae_enc_forward(params, x, a_hat, depth=depth, link_len=link_len,
                           K=K, alpha=alpha, tm=128, tk=128)
    out = jax.block_until_ready(out)

    ref = ref_forward(params, x, a_hat, depth, link_len, K=K, alpha=alpha)
    assert out.shape == (N, out_dim)
    max_diff = jnp.max(jnp.abs(out - ref))
    # bf16 adjacency / bf16 propagated features vs pure-f32 reference.
    assert jnp.allclose(out, ref, atol=2e-2, rtol=2e-2), \
        f"mismatch vs reference (max diff {max_diff})"

    print("KERNEL_OK")
</pallas_src>

<mosaic_0001>
module attributes {stable_mosaic.version = 11 : i64} {
  func.func @_linear_l2norm_kernel(%arg0: i32, %arg1: memref<128x16xf32, #tpu.memory_space<vmem>>, %arg2: memref<128x16xf32, #tpu.memory_space<vmem>>, %arg3: memref<1x128xf32, #tpu.memory_space<vmem>>, %arg4: memref<128x128xf32, #tpu.memory_space<vmem>>) attributes {dimension_semantics = [#tpu.dimension_semantics<parallel>], iteration_bounds = array<i64: 2>, scalar_prefetch = 0 : i64, scratch_operands = 0 : i64, tpu.core_type = #tpu.core_type<tc>, window_params = [{transform_indices = @transform_0, window_bounds = array<i64: 128, 16>}, {pipeline_mode = #tpu.pipeline_mode<synchronous>, transform_indices = @transform_1, window_bounds = array<i64: 128, 16>}, {pipeline_mode = #tpu.pipeline_mode<synchronous>, transform_indices = @transform_2, window_bounds = array<i64: 1, 128>}, {transform_indices = @transform_3, window_bounds = array<i64: 128, 128>}]} {
    %c0 = arith.constant 0 : index
    %c0_0 = arith.constant 0 : index
    %0 = vector.load %arg1[%c0, %c0_0] : memref<128x16xf32, #tpu.memory_space<vmem>>, vector<128x16xf32>
    %c0_1 = arith.constant 0 : index
    %c0_2 = arith.constant 0 : index
    %1 = vector.load %arg2[%c0_1, %c0_2] : memref<128x16xf32, #tpu.memory_space<vmem>>, vector<128x16xf32>
    %cst = arith.constant dense<0.000000e+00> : vector<128x128xf32>
    %2 = tpu.matmul %0, %1, %cst {dimension_numbers = #tpu.dot_dimension_numbers<[1], [1], [0], [0], [0, 0, 1, 0], [], []>} : vector<128x16xf32>, vector<128x16xf32>, vector<128x128xf32> -> vector<128x128xf32>
    %c0_3 = arith.constant 0 : index
    %c0_4 = arith.constant 0 : index
    %3 = vector.load %arg3[%c0_3, %c0_4] : memref<1x128xf32, #tpu.memory_space<vmem>>, vector<1x128xf32>
    %4 = vector.broadcast %3 : vector<1x128xf32> to vector<128x128xf32>
    %5 = arith.addf %2, %4 : vector<128x128xf32>
    %6 = arith.mulf %5, %5 : vector<128x128xf32>
    %cst_5 = arith.constant dense<0.000000e+00> : vector<128xf32>
    %7 = vector.multi_reduction <add>, %6, %cst_5 [1] : vector<128x128xf32> to vector<128xf32>
    %8 = vector.shape_cast %7 : vector<128xf32> to vector<128x1xf32>
    %cst_6 = arith.constant 1.000000e-24 : f32
    %9 = vector.broadcast %cst_6 : f32 to vector<128x1xf32>
    %10 = arith.maximumf %8, %9 : vector<128x1xf32>
    %11 = math.rsqrt %10 : vector<128x1xf32>
    %cst_7 = arith.constant 1.800000e+00 : f32
    %12 = vector.broadcast %cst_7 : f32 to vector<128x1xf32>
    %13 = arith.mulf %12, %11 : vector<128x1xf32>
    %14 = vector.broadcast %13 : vector<128x1xf32> to vector<128x128xf32>
    %15 = arith.mulf %5, %14 : vector<128x128xf32>
    %c0_8 = arith.constant 0 : index
    %c0_9 = arith.constant 0 : index
    %16 = vector.load %arg4[%c0_8, %c0_9] : memref<128x128xf32, #tpu.memory_space<vmem>>, vector<128x128xf32>
    tpu.vector_store %arg4[%c0_8, %c0_9], %15 {strides = array<i32>} : memref<128x128xf32, #tpu.memory_space<vmem>>, vector<128x128xf32>,
    return
  }
  func.func @transform_0(%arg0: i32) -> (i32, i32) {
    %c0_i32 = arith.constant 0 : i32
    %c0_i32_0 = arith.constant 0 : i32
    return %arg0, %c0_i32 : i32, i32
  }
  func.func @transform_1(%arg0: i32) -> (i32, i32) {
    %c0_i32 = arith.constant 0 : i32
    %c0_i32_0 = arith.constant 0 : i32
    %c0_i32_1 = arith.constant 0 : i32
    return %c0_i32, %c0_i32_0 : i32, i32
  }
  func.func @transform_2(%arg0: i32) -> (i32, i32) {
    %c0_i32 = arith.constant 0 : i32
    %c0_i32_0 = arith.constant 0 : i32
    %c0_i32_1 = arith.constant 0 : i32
    return %c0_i32, %c0_i32_0 : i32, i32
  }
  func.func @transform_3(%arg0: i32) -> (i32, i32) {
    %c0_i32 = arith.constant 0 : i32
    %c0_i32_0 = arith.constant 0 : i32
    return %arg0, %c0_i32 : i32, i32
  }
}

</mosaic_0001>

<bundles_post_ra>
// kernel: tpu_custom_call.1
= control target key start
LH: loop header
LB: loop body
LE: loop exit
PB: predicated region body
PF: predicated region fallthrough
CT: control target
= control target key end

     0   :  { %8 = vsyncpa [#allocation3], 0  ;;  %s1412_s0 = inlined_call_operand.vmem [shape: f32[256,16], index: 0, kind: input, shape index: {}]   ;;  %s1413_s1 = inlined_call_operand.vmem [shape: f32[128,16], index: 1, kind: input, shape index: {}]   ;;  %s1414_s2 = inlined_call_operand.vmem [shape: f32[1,128], index: 2, kind: input, shape index: {}]   ;;  %s1415_s3 = inlined_call_operand.hbm [shape: f32[256,128], index: 3, kind: output, shape index: {}]  }
   0x1   :  { %10 = vsyncpa [#allocation3 + $0x1], 0  ;;  %s973_s12 = smov 0   ;;  %s975_s13 = smov 0  }
   0x2   :  { %s977_s14 = smov 0   ;;  %s979_s15 = smov 0  }
   0x3 LB: > { %s994_s16 = sadd.s32 4294967295, %s949_s15   ;;  %s720_s17 = sadd.s32 4294967294, %s949_s15   ;;  %s949_s15 = sphi %s979_s15, %s1423_s15   ;;  %s945_s14 = sphi %s977_s14, %s1422_s14   ;;  %s941_s13 = sphi %s975_s13, %s1421_s13   ;;  %s937_s12 = sphi %s973_s12, %s1420_s12  }
   0x4   : > { %s998_s18 = sadd.s32 1, %s949_s15   ;;  %s91_s19 = sadd.s32 1, %s945_s14 }
   0x5   : > { %s88_s20 = ssub.s32 %s949_s15, %s998_s18  ;;  %p101_p0 = scmp.ne.s32.totalorder %s945_s14, %s941_s13 }
   0x6   : > { %p89_p1 = scmp.eq.s32.totalorder %s88_s20, 0  ;;  %p102_p2 = scmp.eq.s32.totalorder %s994_s16, 1 }
   0x7   : > { %p107_p3 = scmp.ne.s32.totalorder %s941_s13, %s937_s12  ;;  %p108_p4 = scmp.eq.s32.totalorder %s720_s17, 1 }
   0x8   : > { %s1009_s21 = scalar_select %p89_p1, %s945_s14, %s91_s19  }
   0x9   : > { %p1011_p5 = por %p102_p2, %p101_p0  ;;  %p1015_p6 = por %p108_p4, %p107_p3 }
   0xa   : > { %p723_p7 = scmp.ge.s32.totalorder %s949_s15, 1  ;;  %p141_p8 = scmp.lt.s32.totalorder %s949_s15, 3 }
   0xc   : > { %p142_p9 = pnand %p723_p7, %p141_p8 }
   0xd   : > { %s725_s30 = sshll.u32 (!%p142_p9), %s994_s16, 4  ;;  %s162_s27 = sand.u32 (!%p142_p9), 1, %s941_s13  }
   0xe   : > { %145 = sbr.rel (%p142_p9) target bundleno = 405 (0x195), region = 32  ;;  %p166_p10 = scmp.lt.s32.totalorder (!%p142_p9), %s725_s30, 31 }
   0xf   : > { %s724_s28 = sshll.u32 (!%p142_p9), %s162_s27, 7  ;;  %s643_s8 = scalar_lea.sflag (!%p142_p9), [#allocation3], %s162_s27 }
  0x10   : > { %s1266_s29 = scalar_lea.vmem (!%p142_p9), [#allocation2], %s724_s28  ;;  %s907_s19 = scalar_lea.hbm (!%p142_p9), %s1415_s3, 256 }
  0x11   : > { %s655_s6 = sshll.u32 (!%p142_p9), %s1266_s29, 4  ;;  %s656_s6 = int_to_ptr.vmem [resolvable:$true] %s655_s6 }
  0x13   : > { %v203_v0 = vld [vmem:[%s1413_s1 + $0x78] sm:$0xff]  ;;  %vm208_vm0 = vcmask 130048   ;;  %v202_v1 = vld [vmem:[%s1413_s1 + $0x70] sm:$0xff]  ;;  %v201_v2 = vld [vmem:[%s1413_s1 + $0x68] sm:$0xff]  ;;  %s1425_s30 = smov (!%p166_p10, %s725_s30), 31 }
  0x14   : > { %727 = vmatpush.xpose.msk.msra.mxu0 %vm208_vm0, %v203_v0  ;;  %765 = vmatpush.xpose.msk.msra.mxu1 %vm208_vm0, %v203_v0  ;;  %v200_v3 = vld [vmem:[%s1413_s1 + $0x60] sm:$0xff]  ;;  %v199_v4 = vld [vmem:[%s1413_s1 + $0x58] sm:$0xff]  ;;  %v198_v5 = vld [vmem:[%s1413_s1 + $0x50] sm:$0xff]  ;;  %s726_s10 = sshll.u32 %s1425_s30, 3  ;;  %s764_s30 = sshll.u32 %s994_s16, 7 }
  0x15   : > { %766 = vmatpush.xpose.msk.msra.mxu2 %vm208_vm0, %v203_v0  ;;  %767 = vmatpush.xpose.msk.msra.mxu3 %vm208_vm0, %v203_v0  ;;  %v197_v6 = vld [vmem:[%s1413_s1 + $0x48] sm:$0xff]  ;;  %v196_v7 = vld [vmem:[%s1413_s1 + $0x40] sm:$0xff]  ;;  %v195_v8 = vld [vmem:[%s1413_s1 + $0x38] sm:$0xff]  ;;  %s1133_s24 = scalar_lea.vmem %s1412_s0, %s726_s10  ;;  %s654_s16 = scalar_lea.hbm %s1415_s3, %s764_s30 }
  0x16   : > { %v194_v9 = vld [vmem:[%s1413_s1 + $0x30] sm:$0xff]  ;;  %v193_v10 = vld [vmem:[%s1413_s1 + $0x28] sm:$0xff]  ;;  %v192_v11 = vld [vmem:[%s1413_s1 + $0x20] sm:$0xff]  ;;  %s657_s7 = sshll.u32 %s654_s16, 4  ;;  %s658_s7 = int_to_ptr.hbm [resolvable:$true] %s657_s7 }
  0x17   : > { %v191_v12 = vld [vmem:[%s1413_s1 + $0x18] sm:$0xff]  ;;  %v190_v13 = vld [vmem:[%s1413_s1 + $0x10] sm:$0xff]  ;;  %v189_v14 = vld [vmem:[%s1413_s1 + $0x8] sm:$0xff]  ;;  %s901_s9 = sshra.s32 %s658_s7, 4  ;;  %s902_s9 = int_to_ptr.hbm [resolvable:$true] %s901_s9 }
  0x18   : > { %728 = vmatpush.xpose.msk.msra.mxu0 %vm208_vm0, %v202_v1  ;;  %768 = vmatpush.xpose.msk.msra.mxu1 %vm208_vm0, %v202_v1  ;;  %v188_v15 = vld [vmem:[%s1413_s1] sm:$0xff]  ;;  %v173_v20 = vld [vmem:[%s1133_s24 + $0x8] sm:$0xff]  ;;  %v174_v24 = vld [vmem:[%s1133_s24 + $0x10] sm:$0xff]  ;;  %s903_s10 = scalar_lea.hbm %s902_s9, 128  ;;  %p908_p0 = scmp.lt.s32.totalorder %s902_s9, %s1415_s3 }
  0x19   : > { %769 = vmatpush.xpose.msk.msra.mxu2 %vm208_vm0, %v202_v1  ;;  %770 = vmatpush.xpose.msk.msra.mxu3 %vm208_vm0, %v202_v1  ;;  %v172_v16 = vld [vmem:[%s1133_s24] sm:$0xff]  ;;  %v177_v21 = vld [vmem:[%s1133_s24 + $0x28] sm:$0xff]  ;;  %v178_v25 = vld [vmem:[%s1133_s24 + $0x30] sm:$0xff]  ;;  %p904_p11 = scmp.ne.s32.totalorder %s902_s9, %s903_s10  ;;  %p909_p1 = scmp.lt.s32.totalorder %s907_s19, %s903_s10 }
  0x1a   : > { %v176_v17 = vld [vmem:[%s1133_s24 + $0x20] sm:$0xff]  ;;  %v181_v22 = vld [vmem:[%s1133_s24 + $0x48] sm:$0xff]  ;;  %v182_v26 = vld [vmem:[%s1133_s24 + $0x50] sm:$0xff] }
  0x1b   : > { %v180_v18 = vld [vmem:[%s1133_s24 + $0x40] sm:$0xff]  ;;  %v185_v23 = vld [vmem:[%s1133_s24 + $0x68] sm:$0xff]  ;;  %v186_v27 = vld [vmem:[%s1133_s24 + $0x70] sm:$0xff]  ;;  %p905_p12 = pnand %p904_p11, %p1011_p5  ;;  %p910_p2 = por %p909_p1, %p908_p0 }
  0x1c   : > { %729 = vmatpush.xpose.msk.msra.mxu0 %vm208_vm0, %v201_v2  ;;  %771 = vmatpush.xpose.msk.msra.mxu1 %vm208_vm0, %v201_v2  ;;  %v184_v19 = vld [vmem:[%s1133_s24 + $0x60] sm:$0xff]  ;;  %v175_v28 = vld [vmem:[%s1133_s24 + $0x18] sm:$0xff] }
  0x1d   : > { %772 = vmatpush.xpose.msk.msra.mxu2 %vm208_vm0, %v201_v2  ;;  %773 = vmatpush.xpose.msk.msra.mxu3 %vm208_vm0, %v201_v2  ;;  %v179_v29 = vld [vmem:[%s1133_s24 + $0x38] sm:$0xff]  ;;  %v854_v32 = vld [vmem:[%s1414_s2] ss:$0 sm:$0xff]  ;;  %p906_p13 = pneg %p905_p12 }
  0x1e   : > { %v183_v30 = vld [vmem:[%s1133_s24 + $0x58] sm:$0xff] }
  0x1f   : > { %v187_v31 = vld [vmem:[%s1133_s24 + $0x78] sm:$0xff]  ;;  %p911_p3 = pnand %p910_p2, %p906_p13 }
  0x20   : > { %730 = vmatpush.xpose.msk.msra.mxu0 %vm208_vm0, %v200_v3  ;;  %774 = vmatpush.xpose.msk.msra.mxu1 %vm208_vm0, %v200_v3 }
  0x21   : > { %775 = vmatpush.xpose.msk.msra.mxu2 %vm208_vm0, %v200_v3  ;;  %776 = vmatpush.xpose.msk.msra.mxu3 %vm208_vm0, %v200_v3 }
  0x24   : > { %731 = vmatpush.xpose.msk.msra.mxu0 %vm208_vm0, %v199_v4  ;;  %777 = vmatpush.xpose.msk.msra.mxu1 %vm208_vm0, %v199_v4 }
  0x25   : > { %778 = vmatpush.xpose.msk.msra.mxu2 %vm208_vm0, %v199_v4  ;;  %779 = vmatpush.xpose.msk.msra.mxu3 %vm208_vm0, %v199_v4 }
  0x28   : > { %732 = vmatpush.xpose.msk.msra.mxu0 %vm208_vm0, %v198_v5  ;;  %780 = vmatpush.xpose.msk.msra.mxu1 %vm208_vm0, %v198_v5 }
  0x29   : > { %781 = vmatpush.xpose.msk.msra.mxu2 %vm208_vm0, %v198_v5  ;;  %782 = vmatpush.xpose.msk.msra.mxu3 %vm208_vm0, %v198_v5 }
  0x2c   : > { %733 = vmatpush.xpose.msk.msra.mxu0 %vm208_vm0, %v197_v6  ;;  %783 = vmatpush.xpose.msk.msra.mxu1 %vm208_vm0, %v197_v6 }
  0x2d   : > { %784 = vmatpush.xpose.msk.msra.mxu2 %vm208_vm0, %v197_v6  ;;  %785 = vmatpush.xpose.msk.msra.mxu3 %vm208_vm0, %v197_v6 }
  0x30   : > { %734 = vmatpush.xpose.msk.msra.mxu0 %vm208_vm0, %v196_v7  ;;  %786 = vmatpush.xpose.msk.msra.mxu1 %vm208_vm0, %v196_v7 }
  0x31   : > { %787 = vmatpush.xpose.msk.msra.mxu2 %vm208_vm0, %v196_v7  ;;  %788 = vmatpush.xpose.msk.msra.mxu3 %vm208_vm0, %v196_v7 }
  0x34   : > { %735 = vmatpush.xpose.msk.msra.mxu0 %vm208_vm0, %v195_v8  ;;  %789 = vmatpush.xpose.msk.msra.mxu1 %vm208_vm0, %v195_v8 }
  0x35   : > { %790 = vmatpush.xpose.msk.msra.mxu2 %vm208_vm0, %v195_v8  ;;  %791 = vmatpush.xpose.msk.msra.mxu3 %vm208_vm0, %v195_v8 }
  0x38   : > { %736 = vmatpush.xpose.msk.msra.mxu0 %vm208_vm0, %v194_v9  ;;  %792 = vmatpush.xpose.msk.msra.mxu1 %vm208_vm0, %v194_v9 }
  0x39   : > { %793 = vmatpush.xpose.msk.msra.mxu2 %vm208_vm0, %v194_v9  ;;  %794 = vmatpush.xpose.msk.msra.mxu3 %vm208_vm0, %v194_v9 }
  0x3c   : > { %737 = vmatpush.xpose.msk.msra.mxu0 %vm208_vm0, %v193_v10  ;;  %795 = vmatpush.xpose.msk.msra.mxu1 %vm208_vm0, %v193_v10 }
  0x3d   : > { %796 = vmatpush.xpose.msk.msra.mxu2 %vm208_vm0, %v193_v10  ;;  %797 = vmatpush.xpose.msk.msra.mxu3 %vm208_vm0, %v193_v10 }
  0x40   : > { %738 = vmatpush.xpose.msk.msra.mxu0 %vm208_vm0, %v192_v11  ;;  %798 = vmatpush.xpose.msk.msra.mxu1 %vm208_vm0, %v192_v11 }
  0x41   : > { %799 = vmatpush.xpose.msk.msra.mxu2 %vm208_vm0, %v192_v11  ;;  %800 = vmatpush.xpose.msk.msra.mxu3 %vm208_vm0, %v192_v11 }
  0x44   : > { %739 = vmatpush.xpose.msk.msra.mxu0 %vm208_vm0, %v191_v12  ;;  %801 = vmatpush.xpose.msk.msra.mxu1 %vm208_vm0, %v191_v12 }
  0x45   : > { %802 = vmatpush.xpose.msk.msra.mxu2 %vm208_vm0, %v191_v12  ;;  %803 = vmatpush.xpose.msk.msra.mxu3 %vm208_vm0, %v191_v12 }
  0x48   : > { %740 = vmatpush.xpose.msk.msra.mxu0 %vm208_vm0, %v190_v13  ;;  %804 = vmatpush.xpose.msk.msra.mxu1 %vm208_vm0, %v190_v13 }
  0x49   : > { %805 = vmatpush.xpose.msk.msra.mxu2 %vm208_vm0, %v190_v13  ;;  %806 = vmatpush.xpose.msk.msra.mxu3 %vm208_vm0, %v190_v13 }
  0x4c   : > { %741 = vmatpush.xpose.msk.msra.mxu0 %vm208_vm0, %v189_v14  ;;  %807 = vmatpush.xpose.msk.msra.mxu1 %vm208_vm0, %v189_v14 }
  0x4d   : > { %808 = vmatpush.xpose.msk.msra.mxu2 %vm208_vm0, %v189_v14  ;;  %809 = vmatpush.xpose.msk.msra.mxu3 %vm208_vm0, %v189_v14 }
  0x50   : > { %742 = vmatpush.xpose.msk.msra.mxu0 %vm208_vm0, %v188_v15  ;;  %810 = vmatpush.xpose.msk.msra.mxu1 %vm208_vm0, %v188_v15 }
  0x51   : > { %811 = vmatpush.xpose.msk.msra.mxu2 %vm208_vm0, %v188_v15  ;;  %812 = vmatpush.xpose.msk.msra.mxu3 %vm208_vm0, %v188_v15 }
  0x53   : > { %743 = vmatmul.msk.f32.vlgmr.msra.gmra.mxu0 %vm208_vm0, %v172_v16  ;;  %747 = vmatmul.msk.f32.vlgmr.msra.gmra.mxu1 %vm208_vm0, %v176_v17 }
  0x54   : > { %751 = vmatmul.msk.f32.vlgmr.msra.gmra.mxu2 %vm208_vm0, %v180_v18  ;;  %755 = vmatmul.msk.f32.vlgmr.msra.gmra.mxu3 %vm208_vm0, %v184_v19 }
  0x5b   : > { %744 = vmatmul.msk.f32.gmra.mxu0 %vm208_vm0, %v173_v20  ;;  %748 = vmatmul.msk.f32.gmra.mxu1 %vm208_vm0, %v177_v21 }
  0x5c   : > { %752 = vmatmul.msk.f32.gmra.mxu2 %vm208_vm0, %v181_v22  ;;  %756 = vmatmul.msk.f32.gmra.mxu3 %vm208_vm0, %v185_v23 }
  0x63   : > { %745 = vmatmul.msk.f32.gmra.mxu0 %vm208_vm0, %v174_v24  ;;  %749 = vmatmul.msk.f32.gmra.mxu1 %vm208_vm0, %v178_v25 }
  0x64   : > { %753 = vmatmul.msk.f32.gmra.mxu2 %vm208_vm0, %v182_v26  ;;  %757 = vmatmul.msk.f32.gmra.mxu3 %vm208_vm0, %v186_v27 }
  0x6b   : > { %746 = vmatmul.msk.f32.gmra.mxu0 %vm208_vm0, %v175_v28  ;;  %750 = vmatmul.msk.f32.gmra.mxu1 %vm208_vm0, %v179_v29 }
  0x6c   : > { %754 = vmatmul.msk.f32.gmra.mxu2 %vm208_vm0, %v183_v30  ;;  %758 = vmatmul.msk.f32.gmra.mxu3 %vm208_vm0, %v187_v31 }
  0xd0   : > { %v322_v33 = vpop.f32.mrf.mxu0  ;;  %v334_v34 = vpop.f32.mrf.mxu1 }
  0xd1   : > { %v1174_v35 = vadd.f32 %v854_v32, %v322_v33  ;;  %v1176_v36 = vadd.f32 %v854_v32, %v334_v34 }
  0xd3   : > { %v374_v37 = vmul.f32 %v1176_v36, %v1176_v36  ;;  %v370_v38 = vmul.f32 %v1174_v35, %v1174_v35 }
  0xd5   : > { %394 = vadd.xlane.f32.xlu2 %v374_v37  ;;  %386 = vadd.xlane.f32.xlu0 %v370_v38 }
  0xd7   : > { %v346_v39 = vpop.f32.mrf.mxu2  ;;  %v358_v40 = vpop.f32.mrf.mxu3 }
  0xd8   : > { %v1182_v41 = vadd.f32 %v854_v32, %v346_v39  ;;  %v325_v42 = vpop.f32.mrf.mxu0  ;;  %v1184_v43 = vadd.f32 %v854_v32, %v358_v40  ;;  %v337_v46 = vpop.f32.mrf.mxu1 }
  0xd9   : > { %v1190_v47 = vadd.f32 %v854_v32, %v337_v46  ;;  %v1192_v50 = vadd.f32 %v854_v32, %v325_v42 }
  0xda   : > { %v378_v44 = vmul.f32 %v1182_v41, %v1182_v41  ;;  %v382_v45 = vmul.f32 %v1184_v43, %v1184_v43 }
  0xdb   : > { %v375_v53 = vmul.f32 %v1190_v47, %v1190_v47  ;;  %v371_v55 = vmul.f32 %v1192_v50, %v1192_v50 }
  0xdd   : > { %402 = vadd.xlane.f32.xlu2 %v378_v44  ;;  %410 = vadd.xlane.f32.xlu0 %v382_v45 }
  0xdf   : > { %v349_v48 = vpop.f32.mrf.mxu2  ;;  %v361_v49 = vpop.f32.mrf.mxu3 }
  0xe0   : > { %v328_v51 = vpop.f32.mrf.mxu0  ;;  %v1202_v57 = vadd.f32 %v854_v32, %v349_v48  ;;  %v340_v59 = vpop.f32.mrf.mxu1  ;;  %v1234_v15 = vadd.f32 %v854_v32, %v361_v49 }
  0xe1   : > { %v1194_v52 = vadd.f32 %v854_v32, %v328_v51  ;;  %v1212_v1 = vadd.f32 %v854_v32, %v340_v59 }
  0xe2   : > { %v379_v63 = vmul.f32 %v1202_v57, %v1202_v57  ;;  %v383_v16 = vmul.f32 %v1234_v15, %v1234_v15 }
  0xe3   : > { %v372_v54 = vmul.f32 %v1194_v52, %v1194_v52  ;;  %v376_v6 = vmul.f32 %v1212_v1, %v1212_v1 }
  0xe5   : > { %396 = vadd.xlane.f32.xlu2 %v375_v53  ;;  %390 = vadd.xlane.f32.xlu1 %v372_v54 }
  0xe6   : > { %388 = vadd.xlane.f32.xlu0 %v371_v55 }
  0xe7   : > { %v352_v56 = vpop.f32.mrf.mxu2  ;;  %v364_v60 = vpop.f32.mrf.mxu3 }
  0xe8   : > { %v1204_v58 = vadd.f32 %v854_v32, %v352_v56  ;;  %v331_v62 = vpop.f32.mrf.mxu0  ;;  %v343_v7 = vpop.f32.mrf.mxu1  ;;  %v1222_v9 = vadd.f32 %v854_v32, %v364_v60 }
  0xe9   : > { %v1210_v0 = vadd.f32 %v854_v32, %v331_v62  ;;  %v1224_v10 = vadd.f32 %v854_v32, %v343_v7 }
  0xea   : > { %v380_v61 = vmul.f32 %v1204_v58, %v1204_v58  ;;  %v384_v12 = vmul.f32 %v1222_v9, %v1222_v9 }
  0xeb   : > { %v373_v4 = vmul.f32 %v1210_v0, %v1210_v0  ;;  %v377_v13 = vmul.f32 %v1224_v10, %v1224_v10 }
  0xed   : > { %406 = vadd.xlane.f32.xlu1 %v380_v61 }
  0xee   : > { %404 = vadd.xlane.f32.xlu0 %v379_v63 }
  0xef   : > { %v355_v2 = vpop.f32.mrf.mxu2  ;;  %v367_v8 = vpop.f32.mrf.mxu3 }
  0xf0   : > { %v1214_v3 = vadd.f32 %v854_v32, %v355_v2  ;;  %v1226_v11 = vadd.f32 %v854_v32, %v367_v8 }
  0xf2   : > { %v381_v5 = vmul.f32 %v1214_v3, %v1214_v3  ;;  %v385_v14 = vmul.f32 %v1226_v11, %v1226_v11 }
  0xf4   : > { %408 = vadd.xlane.f32.xlu2 %v381_v5 }
  0xf5   : > { %392 = vadd.xlane.f32.xlu1 %v373_v4 }
  0xf6   : > { %398 = vadd.xlane.f32.xlu0 %v376_v6 }
  0xfc   : > { %414 = vadd.xlane.f32.xlu2 %v384_v12 }
  0xfd   : > { %400 = vadd.xlane.f32.xlu1 %v377_v13 }
  0xfe   : > { %416 = vadd.xlane.f32.xlu0 %v385_v14 }
 0x105   : > { %412 = vadd.xlane.f32.xlu1 %v383_v16 }
 0x148   : > { %v395_v17 = vpop.xlane.xlu2 %394  ;;  %v387_v18 = vpop.xlane.xlu0 %386 }
 0x149   : > { %v422_v19 = vmax.f32 %v395_v17, 1e-24  ;;  %v418_v20 = vmax.f32 %v387_v18, 1e-24 }
 0x14b   : > { %855 = vrsqrt.f32 %v422_v19  ;;  %vm480_vm1 = vweird.f32 %v422_v19  ;;  %vm440_vm5 = vweird.f32 %v418_v20 }
 0x14c   : > { %857 = vrsqrt.f32 %v418_v20 }
 0x150   : > { %v403_v21 = vpop.xlane.xlu2 %402  ;;  %v411_v22 = vpop.xlane.xlu0 %410 }
 0x151   : > { %v856_v23 = vpop.eup %855  ;;  %v1238_v24 = vmax.f32 %v403_v21, 1e-24  ;;  %v1240_v25 = vmax.f32 %v411_v22, 1e-24 }
 0x152   : > { %v858_v26 = vpop.eup %857  ;;  %v475_v27 = vmul.f32 %v856_v23, %v422_v19  ;;  %vm481_vm2 = vweird.f32 %v856_v23 }
 0x153   : > { %v435_v28 = vmul.f32 %v858_v26, %v418_v20  ;;  %859 = vrsqrt.f32 %v1238_v24  ;;  %vm1245_vm3 = vmor %vm480_vm1, %vm481_vm2  ;;  %vm441_vm4 = vweird.f32 %v858_v26  ;;  %vm560_vm8 = vweird.f32 %v1240_v25 }
 0x154   : > { %v476_v29 = vmul.f32 %v856_v23, %v475_v27  ;;  %861 = vrsqrt.f32 %v1240_v25  ;;  %vm442_vm6 = vmor %vm440_vm5, %vm441_vm4  ;;  %vm520_vm10 = vweird.f32 %v1238_v24 }
 0x155   : > { %v436_v30 = vmul.f32 %v858_v26, %v435_v28 }
 0x156   : > { %v477_v31 = vmul.f32 0.5, %v476_v29 }
 0x157   : > { %v437_v32 = vmul.f32 0.5, %v436_v30 }
 0x158   : > { %v478_v33 = vsub.f32 1.5, %v477_v31  ;;  %v397_v34 = vpop.xlane.xlu2 %396  ;;  %v391_v37 = vpop.xlane.xlu1 %390 }
 0x159   : > { %v860_v38 = vpop.eup %859  ;;  %v438_v40 = vsub.f32 1.5, %v437_v32  ;;  %v1249_v42 = vmax.f32 %v397_v34, 1e-24  ;;  %v1251_v44 = vmax.f32 %v391_v37, 1e-24  ;;  %v389_v45 = vpop.xlane.xlu0 %388 }
 0x15a   : > { %v862_v46 = vpop.eup %861  ;;  %v479_v48 = vmul.f32 %v856_v23, %v478_v33  ;;  %v515_v49 = vmul.f32 %v860_v38, %v1238_v24  ;;  %v1254_v51 = vmax.f32 %v389_v45, 1e-24  ;;  %vm521_vm7 = vweird.f32 %v860_v38 }
 0x15b   : > { %v439_v53 = vmul.f32 %v858_v26, %v438_v40  ;;  %v555_v54 = vmul.f32 %v862_v46, %v1240_v25  ;;  %863 = vrsqrt.f32 %v1249_v42  ;;  %vm561_vm9 = vweird.f32 %v862_v46  ;;  %vm522_vm11 = vmor %vm520_vm10, %vm521_vm7 }
 0x15c   : > { %v483_v55 = vsel %vm1245_vm3, %v856_v23, %v479_v48  ;;  %v516_v56 = vmul.f32 %v860_v38, %v515_v49  ;;  %865 = vrsqrt.f32 %v1251_v44  ;;  %vm562_vm12 = vmor %vm560_vm8, %vm561_vm9  ;;  %vm490_vm13 = vweird.f32 %v1249_v42 }
 0x15d   : > { %v598_v59 = vmul.f32 1.8, %v483_v55  ;;  %v443_v60 = vsel %vm442_vm6, %v858_v26, %v439_v53  ;;  %v556_v61 = vmul.f32 %v862_v46, %v555_v54  ;;  %867 = vrsqrt.f32 %v1254_v51 }
 0x15e   : > { %v594_v62 = vmul.f32 1.8, %v443_v60  ;;  %v517_v63 = vmul.f32 0.5, %v516_v56  ;;  %vm460_vm0 = vweird.f32 %v1251_v44  ;;  %vm450_vm4 = vweird.f32 %v1254_v51 }
 0x15f   : > { %v614_v2 = vmul.f32 %v598_v59, %v1176_v36  ;;  %v557_v4 = vmul.f32 0.5, %v556_v61 }
 0x160   : > { %v610_v5 = vmul.f32 %v594_v62, %v1174_v35  ;;  %v518_v6 = vsub.f32 1.5, %v517_v63  ;;  %v407_v7 = vpop.xlane.xlu1 %406 }
 0x161   : > { %v864_v8 = vpop.eup %863  ;;  %630 = vst [vmem:[%s1266_s29 + $0x20] sm:$0xff] %v614_v2  ;;  %v558_v12 = vsub.f32 1.5, %v557_v4  ;;  %v1270_v13 = vmax.f32 %v407_v7, 1e-24  ;;  %v405_v14 = vpop.xlane.xlu0 %404 }
 0x162   : > { %v866_v36 = vpop.eup %865  ;;  %626 = vst [vmem:[%s1266_s29] sm:$0xff] %v610_v5  ;;  %v519_v16 = vmul.f32 %v860_v38, %v518_v6  ;;  %v485_v35 = vmul.f32 %v864_v8, %v1249_v42  ;;  %v1275_v17 = vmax.f32 %v405_v14, 1e-24  ;;  %vm491_vm14 = vweird.f32 %v864_v8 }
 0x163   : > { %v559_v18 = vmul.f32 %v862_v46, %v558_v12  ;;  %v455_v19 = vmul.f32 %v866_v36, %v1251_v44  ;;  %869 = vrsqrt.f32 %v1270_v13  ;;  %v868_v20 = vpop.eup %867  ;;  %vm461_vm15 = vweird.f32 %v866_v36  ;;  %vm492_vm1 = vmor %vm490_vm13, %vm491_vm14 }
 0x164   : > { %v523_v21 = vsel %vm522_vm11, %v860_v38, %v519_v16  ;;  %v486_v22 = vmul.f32 %v864_v8, %v485_v35  ;;  %871 = vrsqrt.f32 %v1275_v17  ;;  %v445_v27 = vmul.f32 %v868_v20, %v1254_v51  ;;  %vm462_vm3 = vmor %vm460_vm0, %vm461_vm15 }
 0x165   : > { %v602_v23 = vmul.f32 1.8, %v523_v21  ;;  %v563_v24 = vsel %vm562_vm12, %v862_v46, %v559_v18  ;;  %v456_v26 = vmul.f32 %v866_v36, %v455_v19  ;;  %vm451_vm2 = vweird.f32 %v868_v20 }
 0x166   : > { %v606_v28 = vmul.f32 1.8, %v563_v24  ;;  %v487_v29 = vmul.f32 0.5, %v486_v22  ;;  %v446_v32 = vmul.f32 %v868_v20, %v445_v27  ;;  %vm452_vm5 = vmor %vm450_vm4, %vm451_vm2  ;;  %vm540_vm7 = vweird.f32 %v1270_v13 }
 0x167   : > { %v618_v30 = vmul.f32 %v602_v23, %v1182_v41  ;;  %v457_v31 = vmul.f32 0.5, %v456_v26  ;;  %v409_v25 = vpop.xlane.xlu2 %408  ;;  %vm530_vm10 = vweird.f32 %v1275_v17 }
 0x168   : > { %v622_v33 = vmul.f32 %v606_v28, %v1184_v43  ;;  %v488_v34 = vsub.f32 1.5, %v487_v29  ;;  %v1288_v37 = vmax.f32 %v409_v25, 1e-24  ;;  %v393_v38 = vpop.xlane.xlu1 %392  ;;  %v447_v45 = vmul.f32 0.5, %v446_v32 }
 0x169   : > { %v1290_v39 = vpop.eup %869  ;;  %634 = vst [vmem:[%s1266_s29 + $0x40] sm:$0xff] %v618_v30  ;;  %v458_v40 = vsub.f32 1.5, %v457_v31  ;;  %v1293_v41 = vmax.f32 %v393_v38, 1e-24  ;;  %v399_v46 = vpop.xlane.xlu0 %398 }
 0x16a   : > { %v872_v48 = vpop.eup %871  ;;  %638 = vst [vmem:[%s1266_s29 + $0x60] sm:$0xff] %v622_v33  ;;  %v489_v49 = vmul.f32 %v864_v8, %v488_v34  ;;  %v535_v43 = vmul.f32 %v1290_v39, %v1270_v13  ;;  %873 = vrsqrt.f32 %v1288_v37  ;;  %v448_v54 = vsub.f32 1.5, %v447_v45 }
 0x16b   : > { %v459_v53 = vmul.f32 %v866_v36, %v458_v40  ;;  %v525_v55 = vmul.f32 %v872_v48, %v1275_v17  ;;  %875 = vrsqrt.f32 %v1293_v41  ;;  %v1308_v2 = vmax.f32 %v399_v46, 1e-24 }
 0x16c   : > { %v493_v56 = vsel %vm492_vm1, %v864_v8, %v489_v49  ;;  %v536_v44 = vmul.f32 %v1290_v39, %v535_v43  ;;  %v449_v61 = vmul.f32 %v868_v20, %v448_v54  ;;  %vm541_vm6 = vweird.f32 %v1290_v39 }
 0x16d   : > { %v599_v59 = vmul.f32 1.8, %v493_v56  ;;  %v463_v60 = vsel %vm462_vm3, %v866_v36, %v459_v53  ;;  %v526_v62 = vmul.f32 %v872_v48, %v525_v55  ;;  %877 = vrsqrt.f32 %v1308_v2  ;;  %vm542_vm9 = vmor %vm540_vm7, %vm541_vm6 }
 0x16e   : > { %v596_v42 = vmul.f32 1.8, %v463_v60  ;;  %v537_v63 = vmul.f32 0.5, %v536_v44  ;;  %v453_v5 = vsel %vm452_vm5, %v868_v20, %v449_v61  ;;  %vm531_vm8 = vweird.f32 %v872_v48 }
 0x16f   : > { %v615_v4 = vmul.f32 %v599_v59, %v1190_v47  ;;  %v527_v51 = vmul.f32 0.5, %v526_v62  ;;  %v415_v6 = vpop.xlane.xlu2 %414  ;;  %v595_v12 = vmul.f32 1.8, %v453_v5  ;;  %vm532_vm11 = vmor %vm530_vm10, %vm531_vm8  ;;  %vm550_vm12 = vweird.f32 %v1288_v37 }
 0x170   : > { %v874_v7 = vpop.eup %873  ;;  %v612_v8 = vmul.f32 %v596_v42, %v1194_v52  ;;  %v538_v14 = vsub.f32 1.5, %v537_v63  ;;  %v401_v36 = vpop.xlane.xlu1 %400  ;;  %v1320_v52 = vmax.f32 %v415_v6, 1e-24  ;;  %vm470_vm0 = vweird.f32 %v1293_v41 }
 0x171   : > { %631 = vst [vmem:[%s1266_s29 + $0x28] sm:$0xff] %v615_v4  ;;  %v528_v16 = vsub.f32 1.5, %v527_v51  ;;  %v545_v47 = vmul.f32 %v874_v7, %v1288_v37  ;;  %v876_v35 = vpop.eup %875  ;;  %v611_v18 = vmul.f32 %v595_v12, %v1192_v50  ;;  %v1322_v20 = vmax.f32 %v401_v36, 1e-24  ;;  %v417_v23 = vpop.xlane.xlu0 %416 }
 0x172   : > { %628 = vst [vmem:[%s1266_s29 + $0x10] sm:$0xff] %v612_v8  ;;  %v539_v19 = vmul.f32 %v1290_v39, %v538_v14  ;;  %v465_v22 = vmul.f32 %v876_v35, %v1293_v41  ;;  %879 = vrsqrt.f32 %v1320_v52  ;;  %vm551_vm13 = vweird.f32 %v874_v7 }
 0x173   : > { %v529_v21 = vmul.f32 %v872_v48, %v528_v16  ;;  %v546_v13 = vmul.f32 %v874_v7, %v545_v47  ;;  %627 = vst [vmem:[%s1266_s29 + $0x8] sm:$0xff] %v611_v18  ;;  %v878_v29 = vpop.eup %877  ;;  %881 = vrsqrt.f32 %v1322_v20  ;;  %v1334_v30 = vmax.f32 %v417_v23, 1e-24  ;;  %vm552_vm15 = vmor %vm550_vm12, %vm551_vm13 }
 0x174   : > { %v543_v24 = vsel %vm542_vm9, %v1290_v39, %v539_v19  ;;  %v466_v28 = vmul.f32 %v876_v35, %v465_v22  ;;  %v495_v33 = vmul.f32 %v878_v29, %v1308_v2  ;;  %vm471_vm14 = vweird.f32 %v876_v35 }
 0x175   : > { %v604_v50 = vmul.f32 1.8, %v543_v24  ;;  %v533_v26 = vsel %vm532_vm11, %v872_v48, %v529_v21  ;;  %v547_v27 = vmul.f32 0.5, %v546_v13  ;;  %883 = vrsqrt.f32 %v1334_v30  ;;  %vm472_vm1 = vmor %vm470_vm0, %vm471_vm14 }
 0x176   : > { %v603_v17 = vmul.f32 1.8, %v533_v26  ;;  %v467_v25 = vmul.f32 0.5, %v466_v28  ;;  %v496_v45 = vmul.f32 %v878_v29, %v495_v33  ;;  %vm501_vm2 = vweird.f32 %v878_v29 }
 0x177   : > { %v620_v31 = vmul.f32 %v604_v50, %v1204_v58  ;;  %v548_v32 = vsub.f32 1.5, %v547_v27  ;;  %vm500_vm3 = vweird.f32 %v1308_v2  ;;  %vm580_vm6 = vweird.f32 %v1320_v52 }
 0x178   : > { %v619_v34 = vmul.f32 %v603_v17, %v1202_v57  ;;  %v413_v38 = vpop.xlane.xlu1 %412  ;;  %v468_v40 = vsub.f32 1.5, %v467_v25  ;;  %v880_v48 = vpop.eup %879  ;;  %v497_v49 = vmul.f32 0.5, %v496_v45  ;;  %vm502_vm4 = vmor %vm500_vm3, %vm501_vm2  ;;  %vm510_vm9 = vweird.f32 %v1322_v20 }
 0x179   : > { %636 = vst [vmem:[%s1266_s29 + $0x50] sm:$0xff] %v620_v31  ;;  %v549_v39 = vmul.f32 %v874_v7, %v548_v32  ;;  %v1341_v46 = vmax.f32 %v413_v38, 1e-24  ;;  %v575_v43 = vmul.f32 %v880_v48, %v1320_v52  ;;  %v882_v53 = vpop.eup %881  ;;  %vm581_vm5 = vweird.f32 %v880_v48 }
 0x17a   : > { %635 = vst [vmem:[%s1266_s29 + $0x48] sm:$0xff] %v619_v34  ;;  %v469_v57 = vmul.f32 %v876_v35, %v468_v40  ;;  %v498_v56 = vsub.f32 1.5, %v497_v49  ;;  %v505_v37 = vmul.f32 %v882_v53, %v1322_v20  ;;  %vm511_vm7 = vweird.f32 %v882_v53  ;;  %vm582_vm8 = vmor %vm580_vm6, %vm581_vm5 }
 0x17b   : > { %v553_v58 = vsel %vm552_vm15, %v874_v7, %v549_v39  ;;  %885 = vrsqrt.f32 %v1341_v46  ;;  %v576_v44 = vmul.f32 %v880_v48, %v575_v43  ;;  %v884_v59 = vpop.eup %883  ;;  %vm590_vm10 = vweird.f32 %v1334_v30  ;;  %vm512_vm12 = vmor %vm510_vm9, %vm511_vm7 }
 0x17c   : > { %v605_v54 = vmul.f32 1.8, %v553_v58  ;;  %v473_v55 = vsel %vm472_vm1, %v876_v35, %v469_v57  ;;  %v499_v61 = vmul.f32 %v878_v29, %v498_v56  ;;  %v506_v42 = vmul.f32 %v882_v53, %v505_v37 }
 0x17d   : > { %v597_v60 = vmul.f32 1.8, %v473_v55  ;;  %v577_v62 = vmul.f32 0.5, %v576_v44  ;;  %v585_v63 = vmul.f32 %v884_v59, %v1334_v30  ;;  %vm591_vm11 = vweird.f32 %v884_v59 }
 0x17e   : > { %v621_v41 = vmul.f32 %v605_v54, %v1214_v3  ;;  %v503_v5 = vsel %vm502_vm4, %v878_v29, %v499_v61  ;;  %v507_v6 = vmul.f32 0.5, %v506_v42  ;;  %vm592_vm13 = vmor %vm590_vm10, %vm591_vm11  ;;  %vm570_vm15 = vweird.f32 %v1341_v46 }
 0x17f   : > { %v613_v4 = vmul.f32 %v597_v60, %v1210_v0  ;;  %v578_v51 = vsub.f32 1.5, %v577_v62  ;;  %v586_v7 = vmul.f32 %v884_v59, %v585_v63  ;;  %v600_v8 = vmul.f32 1.8, %v503_v5 }
 0x180   : > { %637 = vst [vmem:[%s1266_s29 + $0x58] sm:$0xff] %v621_v41  ;;  %v508_v12 = vsub.f32 1.5, %v507_v6 }
 0x181   : > { %v886_v3 = vpop.eup %885  ;;  %629 = vst [vmem:[%s1266_s29 + $0x18] sm:$0xff] %v613_v4  ;;  %v579_v2 = vmul.f32 %v880_v48, %v578_v51  ;;  %v587_v14 = vmul.f32 0.5, %v586_v7  ;;  %v616_v0 = vmul.f32 %v600_v8, %v1212_v1 }
 0x182   : > { %v565_v36 = vmul.f32 %v886_v3, %v1341_v46  ;;  %v509_v47 = vmul.f32 %v882_v53, %v508_v12  ;;  %vm571_vm14 = vweird.f32 %v886_v3 }
 0x183   : > { %v583_v16 = vsel %vm582_vm8, %v880_v48, %v579_v2  ;;  %v588_v35 = vsub.f32 1.5, %v587_v14  ;;  %632 = vst [vmem:[%s1266_s29 + $0x30] sm:$0xff] %v616_v0  ;;  %vm572_vm0 = vmor %vm570_vm15, %vm571_vm14 }
 0x184   : > { %v566_v18 = vmul.f32 %v886_v3, %v565_v36  ;;  %v608_v19 = vmul.f32 1.8, %v583_v16  ;;  %v513_v52 = vsel %vm512_vm12, %v882_v53, %v509_v47 }
 0x185   : > { %v589_v21 = vmul.f32 %v884_v59, %v588_v35  ;;  %v601_v13 = vmul.f32 1.8, %v513_v52 }
 0x186   : > { %v567_v1 = vmul.f32 0.5, %v566_v18  ;;  %v624_v20 = vmul.f32 %v608_v19, %v1222_v9 }
 0x187   : > { %v593_v22 = vsel %vm592_vm13, %v884_v59, %v589_v21  ;;  %v617_v24 = vmul.f32 %v601_v13, %v1224_v10 }
 0x188   : > { %v568_v23 = vsub.f32 1.5, %v567_v1  ;;  %640 = vst [vmem:[%s1266_s29 + $0x70] sm:$0xff] %v624_v20  ;;  %v609_v50 = vmul.f32 1.8, %v593_v22 }
 0x189   : > { %633 = vst [vmem:[%s1266_s29 + $0x38] sm:$0xff] %v617_v24 }
 0x18a   : > { %v569_v26 = vmul.f32 %v886_v3, %v568_v23  ;;  %v625_v9 = vmul.f32 %v609_v50, %v1226_v11 }
 0x18c   : > { %v573_v27 = vsel %vm572_vm0, %v886_v3, %v569_v26  ;;  %641 = vst [vmem:[%s1266_s29 + $0x78] sm:$0xff] %v625_v9 }
 0x18d   : > { %v607_v10 = vmul.f32 1.8, %v573_v27 }
 0x18f   : > { %v623_v28 = vmul.f32 %v607_v10, %v1234_v15 }
 0x191   : > { %639 = vst [vmem:[%s1266_s29 + $0x68] sm:$0xff] %v623_v28 }
 0x192   : > { %914 = shalt.err (!%p911_p3)
}
 0x193   : > { %s951_s25 = smov 128   ;;  %s952_s26 = smov 8  }
 0x194   : > { %813 = dma.vmem_to_hbm [thread:$0]  (%p1011_p5), %s656_s6, 2048, %s658_s7, %s643_s8, %s951_s25, %s951_s25, %s952_s26  }
 0x195 PF: > { %p819_p4 = scmp.ge.s32.totalorder %s949_s15, 2  ;;  %s672_s27 = sand.u32 1, %s937_s12  }
 0x196   : > { %s673_s28 = scalar_lea.sflag [#allocation3], %s672_s27 }
 0x197   : > { %p816_p7 = pnand %p819_p4, %p1015_p6 }
 0x199   : > { %p817_p8 = pneg %p816_p7 }
 0x19b   : > { %932 = dma.done.wait (%p817_p8), %s673_s28, 2048  }
 0x19c   : > { %934 = vsyncadd (%p817_p8), %s673_s28, 4294965248  ;;  %p13_p9 = scmp.ge.s32.totalorder %s998_s18, 4   ;;  %s1420_s12 = smov %s941_s13 }
 0x19d   : > { %s1421_s13 = smov %s945_s14  ;;  %s1422_s14 = smov %s1009_s21 }
 0x19e   : > { %s1423_s15 = smov %s998_s18  ;;  %15 = sbr.rel (!%p13_p9) target bundleno = 3 (0x3), region = 67 }
 0x1a3   :  { %679 = vsyncpa [#allocation3], 1 }
 0x1a4   :  { %681 = vsyncpa [#allocation3 + $0x1], 1 }

</bundles_post_ra>
